<compile_context>
chip_gen: v7x
topology: tpu7x:2x2x1
jax: 0.10.0
libtpu: 0.0.40
codegen_flags: <defaults>
</compile_context>

<pallas_src>
import functools
from math import sqrt

import numpy as np
import jax
import jax.numpy as jnp
from jax.experimental import pallas as pl
from jax.experimental.pallas import tpu as pltpu


def _round_up(a: int, b: int) -> int:
    return ((a + b - 1) // b) * b


def _build_constants(wq, wk, wv, num_heads, mxu_dtype):
    """Host-side: compact fused projection weight + tiny structure matrices."""
    dim_k, dim_in = wq.shape
    dim_v = wv.shape[0]
    nh = num_heads
    dk = dim_k // nh
    dv = dim_v // nh
    npair = nh * nh
    norm = 1.0 / sqrt(dk)

    # Compact fused projection weight, one lane-aligned segment per projection.
    # The 1/sqrt(dk) scale is folded into the q columns.
    wq_t = jnp.asarray(wq, jnp.float32).T * norm          # (dim_in, dim_k)
    wk_t = jnp.asarray(wk, jnp.float32).T                  # (dim_in, dim_k)
    wv_t = jnp.asarray(wv, jnp.float32).T                  # (dim_in, dim_v)
    seg_q = _round_up(dim_k, 128)
    seg_k = _round_up(dim_k, 128)
    seg_v = _round_up(dim_v, 128)

    def _pad_cols(a, width):
        return jnp.pad(a, ((0, 0), (0, width - a.shape[1])))

    w_fused = jnp.concatenate(
        [_pad_cols(wq_t, seg_q), _pad_cols(wk_t, seg_k), _pad_cols(wv_t, seg_v)],
        axis=1).astype(mxu_dtype)                           # (dim_in, seg_q+seg_k+seg_v)

    # Pair-column layout: pair (i, j) -> column i*nh + j.
    # ssum sums each dk-wide Hadamard block into its pair column.
    ssum = np.kron(np.eye(npair, dtype=np.float32), np.ones((dk, 1), np.float32))
    # sseg sums exp-scores over key heads j within each query head i (and
    # broadcasts the denominator back to every pair column of that segment).
    sseg = np.kron(np.eye(nh, dtype=np.float32), np.ones((nh, nh), np.float32))
    # amat repeats each pair probability dv times: column (i*nh+j)*dv + e.
    amat = np.kron(np.eye(npair, dtype=np.float32), np.ones((1, dv), np.float32))
    # cmat sums over key heads j and writes the head-interleaved output column
    # e*nh + i directly (so v_exp is a plain contiguous tile of compact v).
    rows = np.arange(npair * dv)
    i_r = rows // (nh * dv)
    e_r = rows % dv
    cmat = np.zeros((npair * dv, nh * dv), np.float32)
    cmat[rows, e_r * nh + i_r] = 1.0

    consts = (w_fused, jnp.asarray(ssum), jnp.asarray(sseg),
              jnp.asarray(amat), jnp.asarray(cmat))
    dims = dict(nh=nh, dk=dk, dv=dv, dim_k=dim_k, dim_v=dim_v,
                seg_q=seg_q, seg_k=seg_k)
    return consts, dims


def _mhsa_kernel(x_ref, w_ref, ssum_ref, sseg_ref, amat_ref, cmat_ref, out_ref,
                 *, nh, dk, dv, dim_k, dim_v, seg_q, seg_k):
    # Compact fused q/k/v projection: one bf16 MXU matmul, f32 accumulation.
    fused = jnp.dot(x_ref[...], w_ref[...], preferred_element_type=jnp.float32)
    q = fused[:, :dim_k]                                   # (TB, nh*dk), norm folded
    k = fused[:, seg_q:seg_q + dim_k]                      # (TB, nh*dk)
    v = fused[:, seg_q + seg_k:seg_q + seg_k + dim_v]      # (TB, nh*dv)

    # Lane expansion of the compact projections (data movement only, no nh^2
    # weight columns).  Pair column layout: (i*nh + j)*dk + d.
    #   q_exp: head-i dk-block repeated nh times;  k_exp: compact k tiled nh times.
    q_exp = jnp.concatenate(
        [q[:, i * dk:(i + 1) * dk] for i in range(nh) for _ in range(nh)], axis=1)
    k_exp = jnp.concatenate([k] * nh, axis=1)

    # Scores for every (query-head, key-head) pair at once.
    # TODO(synk): for nh*dk >= ~128 switch this to a batched dot_general over dk
    # on the MXU and chunk the Hadamard intermediates to bound vreg pressure.
    scores = jnp.dot(q_exp * k_exp, ssum_ref[...],
                     preferred_element_type=jnp.float32)   # (TB, nh*nh)

    # Per-row max (constant within each softmax segment, so it cancels exactly
    # in the softmax ratio).  Single XLU reduce instead of serialized MXU rots.
    m = jnp.max(scores, axis=-1, keepdims=True)
    e = jnp.exp(scores - m)
    denom = jnp.dot(e, sseg_ref[...], preferred_element_type=jnp.float32)
    p = e * pl.reciprocal(denom, approx=True)              # divide on the EUP slot

    # Weighted sum over key heads; output is already head-interleaved
    # (out[b, e*nh + i]) -> single full-width store, no wrapper transpose.
    p_exp = jnp.dot(p, amat_ref[...], preferred_element_type=jnp.float32)
    v_exp = jnp.concatenate([v] * nh, axis=1)              # contiguous tile of v
    out = jnp.dot(p_exp * v_exp, cmat_ref[...], preferred_element_type=jnp.float32)
    out_ref[...] = out.astype(out_ref.dtype)


def _choose_batch_tile(batch, block_batch):
    tb = min(block_batch, _round_up(batch, 8))
    # v7x megacore: make sure a "parallel" grid has >= 2 steps when possible.
    if batch > 8 and pl.cdiv(batch, tb) < 2:
        tb = max(8, _round_up(pl.cdiv(batch, 2), 8))
    return tb


def _vmem_limit_bytes(tb, dim_in, dim_v, w_width, npair, dk, dv, mxu_bytes):
    const_b = dim_in * w_width * mxu_bytes + 4 * (
        npair * dk * npair + npair * npair + npair * npair * dv
        + npair * dv * dim_v)
    io_b = 2 * tb * dim_in * mxu_bytes + 2 * tb * dim_v * 4
    live_b = 4 * tb * (w_width + 3 * npair * dk + 4 * npair + 3 * npair * dv)
    est = 2 * (const_b + io_b + live_b)        # 2x headroom for compiler temps
    return int(min(max(est, 32 * 1024 * 1024), 64 * 1024 * 1024))


def multi_head_self_attention(x, wq, wk, wv, *, num_heads, block_batch=128,
                              mxu_dtype=jnp.bfloat16):
    """Forward of MultiHeadSelfAttention; wq/wk/wv use nn.Linear layout (out, in)."""
    batch, dim_in = x.shape
    dim_k = wq.shape[0]
    dim_v = wv.shape[0]
    assert dim_k % num_heads == 0 and dim_v % num_heads == 0
    nh = num_heads
    dk = dim_k // nh
    dv = dim_v // nh
    npair = nh * nh

    consts, dims = _build_constants(wq, wk, wv, num_heads, mxu_dtype)
    w_fused = consts[0]
    w_width = w_fused.shape[1]

    tb = _choose_batch_tile(batch, block_batch)
    grid = (pl.cdiv(batch, tb),)                 # no host-side pad of x
    kernel = functools.partial(_mhsa_kernel, **dims)
    x_in = x.astype(mxu_dtype)
    out_dtype = x.dtype
    vmem_limit = _vmem_limit_bytes(tb, dim_in, dim_v, w_width, npair, dk, dv,
                                   jnp.dtype(mxu_dtype).itemsize)

    def _call(single_buffer_consts):
        ckw = dict(pipeline_mode=pl.Buffered(1)) if single_buffer_consts else {}
        const_specs = [pl.BlockSpec(c.shape, lambda i: (0, 0), **ckw)
                       for c in consts]
        return pl.pallas_call(
            kernel,
            out_shape=jax.ShapeDtypeStruct((batch, dim_v), out_dtype),
            grid=grid,
            in_specs=[pl.BlockSpec((tb, dim_in), lambda i: (i, 0))] + const_specs,
            out_specs=pl.BlockSpec((tb, dim_v), lambda i: (i, 0)),
            compiler_params=pltpu.CompilerParams(
                dimension_semantics=("parallel",),
                vmem_limit_bytes=vmem_limit),
        )(x_in, *consts)

    try:
        # Grid-invariant constants: single-buffer to halve their VMEM footprint.
        return _call(True)
    except Exception:
        # Fallback for JAX versions without BlockSpec pipeline_mode support.
        return _call(False)


def _reference(x, wq, wk, wv, *, num_heads):
    batch, _ = x.shape
    dim_k = wq.shape[0]
    dim_v = wv.shape[0]
    nh = num_heads
    dk = dim_k // nh
    dv = dim_v // nh
    norm = 1.0 / sqrt(dk)
    q = (x @ wq.T).reshape(batch, nh, dk)
    k = (x @ wk.T).reshape(batch, nh, dk)
    v = (x @ wv.T).reshape(batch, nh, dv)
    dist = jnp.einsum("bik,bjk->bij", q, k) * norm
    dist = jax.nn.softmax(dist, axis=-1)
    att = jnp.einsum("bij,bjd->bid", dist, v)
    return att.transpose(0, 2, 1).reshape(batch, dim_v)


if __name__ == "__main__":
    # Small deterministic setup consistent with the module's forward.
    batch, dim_in, dim_k, dim_v, num_heads = 8, 32, 16, 16, 2

    key = jax.random.PRNGKey(0)
    kx, kq, kk, kv = jax.random.split(key, 4)

    x = jax.random.normal(kx, (batch, dim_in), dtype=jnp.float32)
    # nn.Linear(dim_in, dim_out, bias=False) weight shape: (dim_out, dim_in)
    scale = 1.0 / sqrt(dim_in)
    wq = jax.random.uniform(kq, (dim_k, dim_in), jnp.float32, -scale, scale)
    wk = jax.random.uniform(kk, (dim_k, dim_in), jnp.float32, -scale, scale)
    wv = jax.random.uniform(kv, (dim_v, dim_in), jnp.float32, -scale, scale)

    out = multi_head_self_attention(x, wq, wk, wv, num_heads=num_heads)
    out = jax.block_until_ready(out)

    ref = _reference(x, wq, wk, wv, num_heads=num_heads)
    assert out.shape == (batch, dim_v), out.shape
    # bf16 MXU inputs + approximate EUP reciprocal -> compare at ~1% tolerance.
    assert jnp.allclose(out, ref, atol=5e-2, rtol=5e-2), (
        "mismatch vs. reference, max abs err = "
        f"{float(jnp.max(jnp.abs(out - ref)))}")

    print("KERNEL_OK")
</pallas_src>

<mosaic_0001>
module attributes {stable_mosaic.version = 11 : i64} {
  func.func @_mhsa_kernel(%arg0: i32, %arg1: memref<8x32xbf16, #tpu.memory_space<vmem>>, %arg2: memref<32x384xbf16, #tpu.memory_space<vmem>>, %arg3: memref<32x4xf32, #tpu.memory_space<vmem>>, %arg4: memref<4x4xf32, #tpu.memory_space<vmem>>, %arg5: memref<4x32xf32, #tpu.memory_space<vmem>>, %arg6: memref<32x16xf32, #tpu.memory_space<vmem>>, %arg7: memref<8x16xf32, #tpu.memory_space<vmem>>) attributes {dimension_semantics = [#tpu.dimension_semantics<parallel>], iteration_bounds = array<i64: 1>, scalar_prefetch = 0 : i64, scratch_operands = 0 : i64, tpu.core_type = #tpu.core_type<tc>, window_params = [{transform_indices = @transform_0, window_bounds = array<i64: 8, 32>}, {pipeline_mode = #tpu.pipeline_mode<synchronous>, transform_indices = @transform_1, window_bounds = array<i64: 32, 384>}, {pipeline_mode = #tpu.pipeline_mode<synchronous>, transform_indices = @transform_2, window_bounds = array<i64: 32, 4>}, {pipeline_mode = #tpu.pipeline_mode<synchronous>, transform_indices = @transform_3, window_bounds = array<i64: 4, 4>}, {pipeline_mode = #tpu.pipeline_mode<synchronous>, transform_indices = @transform_4, window_bounds = array<i64: 4, 32>}, {pipeline_mode = #tpu.pipeline_mode<synchronous>, transform_indices = @transform_5, window_bounds = array<i64: 32, 16>}, {transform_indices = @transform_6, window_bounds = array<i64: 8, 16>}]} {
    %c0 = arith.constant 0 : index
    %c0_0 = arith.constant 0 : index
    %0 = vector.load %arg1[%c0, %c0_0] : memref<8x32xbf16, #tpu.memory_space<vmem>>, vector<8x32xbf16>
    %c0_1 = arith.constant 0 : index
    %c0_2 = arith.constant 0 : index
    %1 = vector.load %arg2[%c0_1, %c0_2] : memref<32x384xbf16, #tpu.memory_space<vmem>>, vector<32x384xbf16>
    %cst = arith.constant dense<0.000000e+00> : vector<8x384xf32>
    %2 = tpu.matmul %0, %1, %cst {dimension_numbers = #tpu.dot_dimension_numbers<[1], [0], [0], [1], [0, 0, 1, 1], [], []>} : vector<8x32xbf16>, vector<32x384xbf16>, vector<8x384xf32> -> vector<8x384xf32>
    %3 = vector.extract_strided_slice %2 {offsets = [0, 0], sizes = [8, 16], strides = [1, 1]} : vector<8x384xf32> to vector<8x16xf32>
    %4 = vector.extract_strided_slice %2 {offsets = [0, 128], sizes = [8, 16], strides = [1, 1]} : vector<8x384xf32> to vector<8x16xf32>
    %5 = vector.extract_strided_slice %2 {offsets = [0, 256], sizes = [8, 16], strides = [1, 1]} : vector<8x384xf32> to vector<8x16xf32>
    %6 = vector.extract_strided_slice %3 {offsets = [0, 0], sizes = [8, 8], strides = [1, 1]} : vector<8x16xf32> to vector<8x8xf32>
    %7 = vector.extract_strided_slice %3 {offsets = [0, 0], sizes = [8, 8], strides = [1, 1]} : vector<8x16xf32> to vector<8x8xf32>
    %8 = vector.extract_strided_slice %3 {offsets = [0, 8], sizes = [8, 8], strides = [1, 1]} : vector<8x16xf32> to vector<8x8xf32>
    %9 = vector.extract_strided_slice %3 {offsets = [0, 8], sizes = [8, 8], strides = [1, 1]} : vector<8x16xf32> to vector<8x8xf32>
    %10 = tpu.concatenate %6, %7, %8, %9 in 1 : vector<8x8xf32>, vector<8x8xf32>, vector<8x8xf32>, vector<8x8xf32> -> vector<8x32xf32>
    %11 = tpu.concatenate %4, %4 in 1 : vector<8x16xf32>, vector<8x16xf32> -> vector<8x32xf32>
    %12 = arith.mulf %10, %11 : vector<8x32xf32>
    %c0_3 = arith.constant 0 : index
    %c0_4 = arith.constant 0 : index
    %13 = vector.load %arg3[%c0_3, %c0_4] : memref<32x4xf32, #tpu.memory_space<vmem>>, vector<32x4xf32>
    %cst_5 = arith.constant dense<0.000000e+00> : vector<8x4xf32>
    %14 = tpu.matmul %12, %13, %cst_5 {dimension_numbers = #tpu.dot_dimension_numbers<[1], [0], [0], [1], [0, 0, 1, 1], [], []>} : vector<8x32xf32>, vector<32x4xf32>, vector<8x4xf32> -> vector<8x4xf32>
    %cst_6 = arith.constant dense<0xFF800000> : vector<8xf32>
    %15 = vector.multi_reduction <maximumf>, %14, %cst_6 [1] : vector<8x4xf32> to vector<8xf32>
    %16 = vector.shape_cast %15 : vector<8xf32> to vector<8x1xf32>
    %17 = vector.broadcast %16 : vector<8x1xf32> to vector<8x4xf32>
    %18 = arith.subf %14, %17 : vector<8x4xf32>
    %19 = math.exp %18 : vector<8x4xf32>
    %c0_7 = arith.constant 0 : index
    %c0_8 = arith.constant 0 : index
    %20 = vector.load %arg4[%c0_7, %c0_8] : memref<4x4xf32, #tpu.memory_space<vmem>>, vector<4x4xf32>
    %cst_9 = arith.constant dense<0.000000e+00> : vector<8x4xf32>
    %21 = tpu.matmul %19, %20, %cst_9 {dimension_numbers = #tpu.dot_dimension_numbers<[1], [0], [0], [1], [0, 0, 1, 1], [], []>} : vector<8x4xf32>, vector<4x4xf32>, vector<8x4xf32> -> vector<8x4xf32>
    %22 = tpu.reciprocal %21 {approx = true} : vector<8x4xf32> -> vector<8x4xf32>
    %23 = arith.mulf %19, %22 : vector<8x4xf32>
    %c0_10 = arith.constant 0 : index
    %c0_11 = arith.constant 0 : index
    %24 = vector.load %arg5[%c0_10, %c0_11] : memref<4x32xf32, #tpu.memory_space<vmem>>, vector<4x32xf32>
    %cst_12 = arith.constant dense<0.000000e+00> : vector<8x32xf32>
    %25 = tpu.matmul %23, %24, %cst_12 {dimension_numbers = #tpu.dot_dimension_numbers<[1], [0], [0], [1], [0, 0, 1, 1], [], []>} : vector<8x4xf32>, vector<4x32xf32>, vector<8x32xf32> -> vector<8x32xf32>
    %26 = tpu.concatenate %5, %5 in 1 : vector<8x16xf32>, vector<8x16xf32> -> vector<8x32xf32>
    %27 = arith.mulf %25, %26 : vector<8x32xf32>
    %c0_13 = arith.constant 0 : index
    %c0_14 = arith.constant 0 : index
    %28 = vector.load %arg6[%c0_13, %c0_14] : memref<32x16xf32, #tpu.memory_space<vmem>>, vector<32x16xf32>
    %cst_15 = arith.constant dense<0.000000e+00> : vector<8x16xf32>
    %29 = tpu.matmul %27, %28, %cst_15 {dimension_numbers = #tpu.dot_dimension_numbers<[1], [0], [0], [1], [0, 0, 1, 1], [], []>} : vector<8x32xf32>, vector<32x16xf32>, vector<8x16xf32> -> vector<8x16xf32>
    %c0_16 = arith.constant 0 : index
    %c0_17 = arith.constant 0 : index
    %30 = vector.load %arg7[%c0_16, %c0_17] : memref<8x16xf32, #tpu.memory_space<vmem>>, vector<8x16xf32>
    tpu.vector_store %arg7[%c0_16, %c0_17], %29 {strides = array<i32>} : memref<8x16xf32, #tpu.memory_space<vmem>>, vector<8x16xf32>,
    return
  }
  func.func @transform_0(%arg0: i32) -> (i32, i32) {
    %c0_i32 = arith.constant 0 : i32
    %c0_i32_0 = arith.constant 0 : i32
    return %arg0, %c0_i32 : i32, i32
  }
  func.func @transform_1(%arg0: i32) -> (i32, i32) {
    %c0_i32 = arith.constant 0 : i32
    %c0_i32_0 = arith.constant 0 : i32
    %c0_i32_1 = arith.constant 0 : i32
    return %c0_i32, %c0_i32_0 : i32, i32
  }
  func.func @transform_2(%arg0: i32) -> (i32, i32) {
    %c0_i32 = arith.constant 0 : i32
    %c0_i32_0 = arith.constant 0 : i32
    %c0_i32_1 = arith.constant 0 : i32
    return %c0_i32, %c0_i32_0 : i32, i32
  }
  func.func @transform_3(%arg0: i32) -> (i32, i32) {
    %c0_i32 = arith.constant 0 : i32
    %c0_i32_0 = arith.constant 0 : i32
    %c0_i32_1 = arith.constant 0 : i32
    return %c0_i32, %c0_i32_0 : i32, i32
  }
  func.func @transform_4(%arg0: i32) -> (i32, i32) {
    %c0_i32 = arith.constant 0 : i32
    %c0_i32_0 = arith.constant 0 : i32
    %c0_i32_1 = arith.constant 0 : i32
    return %c0_i32, %c0_i32_0 : i32, i32
  }
  func.func @transform_5(%arg0: i32) -> (i32, i32) {
    %c0_i32 = arith.constant 0 : i32
    %c0_i32_0 = arith.constant 0 : i32
    %c0_i32_1 = arith.constant 0 : i32
    return %c0_i32, %c0_i32_0 : i32, i32
  }
  func.func @transform_6(%arg0: i32) -> (i32, i32) {
    %c0_i32 = arith.constant 0 : i32
    %c0_i32_0 = arith.constant 0 : i32
    return %arg0, %c0_i32 : i32, i32
  }
}

module attributes {stable_mosaic.version = 11 : i64} {
  func.func @_mhsa_kernel(%arg0: i32, %arg1: memref<8x32xbf16, #tpu.memory_space<vmem>>, %arg2: memref<32x384xbf16, #tpu.memory_space<vmem>>, %arg3: memref<32x4xf32, #tpu.memory_space<vmem>>, %arg4: memref<4x4xf32, #tpu.memory_space<vmem>>, %arg5: memref<4x32xf32, #tpu.memory_space<vmem>>, %arg6: memref<32x16xf32, #tpu.memory_space<vmem>>, %arg7: memref<8x16xf32, #tpu.memory_space<vmem>>) attributes {dimension_semantics = [#tpu.dimension_semantics<parallel>], iteration_bounds = array<i64: 1>, scalar_prefetch = 0 : i64, scratch_operands = 0 : i64, tpu.core_type = #tpu.core_type<tc>, window_params = [{transform_indices = @transform_0, window_bounds = array<i64: 8, 32>}, {pipeline_mode = #tpu.pipeline_mode<synchronous>, transform_indices = @transform_1, window_bounds = array<i64: 32, 384>}, {pipeline_mode = #tpu.pipeline_mode<synchronous>, transform_indices = @transform_2, window_bounds = array<i64: 32, 4>}, {pipeline_mode = #tpu.pipeline_mode<synchronous>, transform_indices = @transform_3, window_bounds = array<i64: 4, 4>}, {pipeline_mode = #tpu.pipeline_mode<synchronous>, transform_indices = @transform_4, window_bounds = array<i64: 4, 32>}, {pipeline_mode = #tpu.pipeline_mode<synchronous>, transform_indices = @transform_5, window_bounds = array<i64: 32, 16>}, {transform_indices = @transform_6, window_bounds = array<i64: 8, 16>}]} {
    %c0 = arith.constant 0 : index
    %c0_0 = arith.constant 0 : index
    %0 = vector.load %arg1[%c0, %c0_0] : memref<8x32xbf16, #tpu.memory_space<vmem>>, vector<8x32xbf16>
    %c0_1 = arith.constant 0 : index
    %c0_2 = arith.constant 0 : index
    %1 = vector.load %arg2[%c0_1, %c0_2] : memref<32x384xbf16, #tpu.memory_space<vmem>>, vector<32x384xbf16>
    %cst = arith.constant dense<0.000000e+00> : vector<8x384xf32>
    %2 = tpu.matmul %0, %1, %cst {dimension_numbers = #tpu.dot_dimension_numbers<[1], [0], [0], [1], [0, 0, 1, 1], [], []>} : vector<8x32xbf16>, vector<32x384xbf16>, vector<8x384xf32> -> vector<8x384xf32>
    %3 = vector.extract_strided_slice %2 {offsets = [0, 0], sizes = [8, 16], strides = [1, 1]} : vector<8x384xf32> to vector<8x16xf32>
    %4 = vector.extract_strided_slice %2 {offsets = [0, 128], sizes = [8, 16], strides = [1, 1]} : vector<8x384xf32> to vector<8x16xf32>
    %5 = vector.extract_strided_slice %2 {offsets = [0, 256], sizes = [8, 16], strides = [1, 1]} : vector<8x384xf32> to vector<8x16xf32>
    %6 = vector.extract_strided_slice %3 {offsets = [0, 0], sizes = [8, 8], strides = [1, 1]} : vector<8x16xf32> to vector<8x8xf32>
    %7 = vector.extract_strided_slice %3 {offsets = [0, 0], sizes = [8, 8], strides = [1, 1]} : vector<8x16xf32> to vector<8x8xf32>
    %8 = vector.extract_strided_slice %3 {offsets = [0, 8], sizes = [8, 8], strides = [1, 1]} : vector<8x16xf32> to vector<8x8xf32>
    %9 = vector.extract_strided_slice %3 {offsets = [0, 8], sizes = [8, 8], strides = [1, 1]} : vector<8x16xf32> to vector<8x8xf32>
    %10 = tpu.concatenate %6, %7, %8, %9 in 1 : vector<8x8xf32>, vector<8x8xf32>, vector<8x8xf32>, vector<8x8xf32> -> vector<8x32xf32>
    %11 = tpu.concatenate %4, %4 in 1 : vector<8x16xf32>, vector<8x16xf32> -> vector<8x32xf32>
    %12 = arith.mulf %10, %11 : vector<8x32xf32>
    %c0_3 = arith.constant 0 : index
    %c0_4 = arith.constant 0 : index
    %13 = vector.load %arg3[%c0_3, %c0_4] : memref<32x4xf32, #tpu.memory_space<vmem>>, vector<32x4xf32>
    %cst_5 = arith.constant dense<0.000000e+00> : vector<8x4xf32>
    %14 = tpu.matmul %12, %13, %cst_5 {dimension_numbers = #tpu.dot_dimension_numbers<[1], [0], [0], [1], [0, 0, 1, 1], [], []>} : vector<8x32xf32>, vector<32x4xf32>, vector<8x4xf32> -> vector<8x4xf32>
    %cst_6 = arith.constant dense<0xFF800000> : vector<8xf32>
    %15 = vector.multi_reduction <maximumf>, %14, %cst_6 [1] : vector<8x4xf32> to vector<8xf32>
    %16 = vector.shape_cast %15 : vector<8xf32> to vector<8x1xf32>
    %17 = vector.broadcast %16 : vector<8x1xf32> to vector<8x4xf32>
    %18 = arith.subf %14, %17 : vector<8x4xf32>
    %19 = math.exp %18 : vector<8x4xf32>
    %c0_7 = arith.constant 0 : index
    %c0_8 = arith.constant 0 : index
    %20 = vector.load %arg4[%c0_7, %c0_8] : memref<4x4xf32, #tpu.memory_space<vmem>>, vector<4x4xf32>
    %cst_9 = arith.constant dense<0.000000e+00> : vector<8x4xf32>
    %21 = tpu.matmul %19, %20, %cst_9 {dimension_numbers = #tpu.dot_dimension_numbers<[1], [0], [0], [1], [0, 0, 1, 1], [], []>} : vector<8x4xf32>, vector<4x4xf32>, vector<8x4xf32> -> vector<8x4xf32>
    %22 = tpu.reciprocal %21 {approx = true} : vector<8x4xf32> -> vector<8x4xf32>
    %23 = arith.mulf %19, %22 : vector<8x4xf32>
    %c0_10 = arith.constant 0 : index
    %c0_11 = arith.constant 0 : index
    %24 = vector.load %arg5[%c0_10, %c0_11] : memref<4x32xf32, #tpu.memory_space<vmem>>, vector<4x32xf32>
    %cst_12 = arith.constant dense<0.000000e+00> : vector<8x32xf32>
    %25 = tpu.matmul %23, %24, %cst_12 {dimension_numbers = #tpu.dot_dimension_numbers<[1], [0], [0], [1], [0, 0, 1, 1], [], []>} : vector<8x4xf32>, vector<4x32xf32>, vector<8x32xf32> -> vector<8x32xf32>
    %26 = tpu.concatenate %5, %5 in 1 : vector<8x16xf32>, vector<8x16xf32> -> vector<8x32xf32>
    %27 = arith.mulf %25, %26 : vector<8x32xf32>
    %c0_13 = arith.constant 0 : index
    %c0_14 = arith.constant 0 : index
    %28 = vector.load %arg6[%c0_13, %c0_14] : memref<32x16xf32, #tpu.memory_space<vmem>>, vector<32x16xf32>
    %cst_15 = arith.constant dense<0.000000e+00> : vector<8x16xf32>
    %29 = tpu.matmul %27, %28, %cst_15 {dimension_numbers = #tpu.dot_dimension_numbers<[1], [0], [0], [1], [0, 0, 1, 1], [], []>} : vector<8x32xf32>, vector<32x16xf32>, vector<8x16xf32> -> vector<8x16xf32>
    %c0_16 = arith.constant 0 : index
    %c0_17 = arith.constant 0 : index
    %30 = vector.load %arg7[%c0_16, %c0_17] : memref<8x16xf32, #tpu.memory_space<vmem>>, vector<8x16xf32>
    tpu.vector_store %arg7[%c0_16, %c0_17], %29 {strides = array<i32>} : memref<8x16xf32, #tpu.memory_space<vmem>>, vector<8x16xf32>,
    return
  }
  func.func @transform_0(%arg0: i32) -> (i32, i32) {
    %c0_i32 = arith.constant 0 : i32
    %c0_i32_0 = arith.constant 0 : i32
    return %arg0, %c0_i32 : i32, i32
  }
  func.func @transform_1(%arg0: i32) -> (i32, i32) {
    %c0_i32 = arith.constant 0 : i32
    %c0_i32_0 = arith.constant 0 : i32
    %c0_i32_1 = arith.constant 0 : i32
    return %c0_i32, %c0_i32_0 : i32, i32
  }
  func.func @transform_2(%arg0: i32) -> (i32, i32) {
    %c0_i32 = arith.constant 0 : i32
    %c0_i32_0 = arith.constant 0 : i32
    %c0_i32_1 = arith.constant 0 : i32
    return %c0_i32, %c0_i32_0 : i32, i32
  }
  func.func @transform_3(%arg0: i32) -> (i32, i32) {
    %c0_i32 = arith.constant 0 : i32
    %c0_i32_0 = arith.constant 0 : i32
    %c0_i32_1 = arith.constant 0 : i32
    return %c0_i32, %c0_i32_0 : i32, i32
  }
  func.func @transform_4(%arg0: i32) -> (i32, i32) {
    %c0_i32 = arith.constant 0 : i32
    %c0_i32_0 = arith.constant 0 : i32
    %c0_i32_1 = arith.constant 0 : i32
    return %c0_i32, %c0_i32_0 : i32, i32
  }
  func.func @transform_5(%arg0: i32) -> (i32, i32) {
    %c0_i32 = arith.constant 0 : i32
    %c0_i32_0 = arith.constant 0 : i32
    %c0_i32_1 = arith.constant 0 : i32
    return %c0_i32, %c0_i32_0 : i32, i32
  }
  func.func @transform_6(%arg0: i32) -> (i32, i32) {
    %c0_i32 = arith.constant 0 : i32
    %c0_i32_0 = arith.constant 0 : i32
    return %arg0, %c0_i32 : i32, i32
  }
}

</mosaic_0001>

<bundles_post_ra>
// kernel: tpu_custom_call.1
= control target key start
LH: loop header
LB: loop body
LE: loop exit
PB: predicated region body
PF: predicated region fallthrough
CT: control target
= control target key end

     0   :  { %v635_v2 = vmov 0   ;;  %s765_s0 = inlined_call_operand.vmem [shape: bf16[8,32], index: 0, kind: input, shape index: {}]   ;;  %s766_s1 = inlined_call_operand.vmem [shape: bf16[32,384], index: 1, kind: input, shape index: {}]   ;;  %s767_s2 = inlined_call_operand.vmem [shape: f32[32,4], index: 2, kind: input, shape index: {}]   ;;  %s768_s3 = inlined_call_operand.vmem [shape: f32[4,4], index: 3, kind: input, shape index: {}]   ;;  %s769_s4 = inlined_call_operand.vmem [shape: f32[4,32], index: 4, kind: input, shape index: {}]   ;;  %s770_s5 = inlined_call_operand.vmem [shape: f32[32,16], index: 5, kind: input, shape index: {}]   ;;  %s771_s6 = inlined_call_operand.hbm [shape: f32[8,16], index: 6, kind: output, shape index: {}]  }
   0x1   :  { %v599_v0 = vld [vmem:[%s766_s1 + $0x4] ss:$12 sps:$4 sm:$0xff]   ;;  %v601_v1 = vld [vmem:[%s766_s1] ss:$12 sps:$4 sm:$0xff]   ;;  %102 = vmatprep.mubr.bf16.mxu0 %v635_v2  ;;  %v602_v3 = vld [vmem:[%s766_s1 + $0x1c] ss:$12 sps:$4 sm:$0xff]  }
   0x2   :  { %70 = vmatprep.subr.bf16.mxu0 %v599_v0  ;;  %v604_v4 = vld [vmem:[%s766_s1 + $0x18] ss:$12 sps:$4 sm:$0xff]  }
   0x3   :  { %71 = vmatpush1.bf16.msra.mxu0 %v601_v1 }
   0x4   :  { %72 = vmatprep.subr.bf16.mxu0 %v602_v3 }
   0x5   :  { %11 = vsyncpa [#allocation3], 0  ;;  %v25_v5 = vld [vmem:[%s765_s0] sm:$0xf]  ;;  %vm66_vm0 = vcmask 261120   ;;  %v171_v7 = vld [vmem:[%s767_s2 + $0x8] sm:$0xff] }
   0x6   :  { %v170_v6 = vld [vmem:[%s767_s2] sm:$0xff]  ;;  %v636_v8 = vmov 0.0|0.0   ;;  %v172_v10 = vld [vmem:[%s767_s2 + $0x10] sm:$0xff]  ;;  %v173_v11 = vld [vmem:[%s767_s2 + $0x18] sm:$0xff]  ;;  %vm637_vm1 = vmmov 0   ;;  %v638_v13 = vmov 0.0  }
   0x7   :  { %73 = vmatpush1.bf16.msra.mxu0 %v604_v4  ;;  %v581_v9 = vpack.c.bf16 %v171_v7, %v170_v6  ;;  %v584_v12 = vpack.c.bf16 %v173_v11, %v172_v10  ;;  %540 = vmatprep.subr.bf16.mxu1 %v638_v13  ;;  %s639_s14 = smov 8   ;;  %s640_s15 = smov 16   ;;  %vm158_vm2 = vcmask 64512   ;;  %vm160_vm3 = vcmask 130048   ;;  %v605_v26 = vld [vmem:[%s766_s1 + $0x8] ss:$12 sps:$4 sm:$0xff]  }
   0x8   :  { %580 = vmatprep.subr.bf16.mxu0 %v636_v8  ;;  %544 = vmatprep.mubr.msk.bf16.mxu1 %vm637_vm1, %v638_v13  ;;  %vm162_vm4 = vcmask 195584   ;;  %v606_v27 = vld [vmem:[%s766_s1 + $0x20] ss:$12 sps:$4 sm:$0xff]   ;;  %vm247_vm5 = vcmask 31744   ;;  %vm258_vm6 = vcmask 1043456   ;;  %v419_v48 = vld [vmem:[%s770_s5 + $0x10] sm:$0xff] }
   0x9   :  { %541 = vmatpush3.bf16.msra.mxu1 %v605_v26  ;;  %v254_v31 = vld [vmem:[%s768_s3] sm:$0xf]  ;;  %v418_v42 = vld [vmem:[%s770_s5 + $0x8] sm:$0xff]  ;;  %v420_v49 = vld [vmem:[%s770_s5 + $0x18] sm:$0xff]  ;;  %s641_s28 = smov [#allocation2]  }
   0xa   :  { %515 = vmatmul.mubr.msk.bf16.vlgmr.msra.gmra.mrb[0].mxu0 %vm66_vm0, %v25_v5  ;;  %542 = vmatprep.subr.bf16.mxu1 %v638_v13  ;;  %v334_v40 = vld [vmem:[%s769_s4] sm:$0xf]  ;;  %v590_v50 = vpack.c.bf16 %v420_v49, %v419_v48  ;;  %s501_s29 = sshll.u32 %s641_s28, 4  ;;  %s502_s29 = int_to_ptr.vmem [resolvable:$true] %s501_s29 }
   0xb   :  { %582 = vmatpush3.bf16.msra.mxu0 %v581_v9  ;;  %556 = vmatprep.mubr.msk.f32.mxu0 %vm637_vm1, %v638_v13  ;;  %v417_v41 = vld [vmem:[%s770_s5] sm:$0xff]  ;;  %s611_s30 = scalar_lea.vmem %s502_s29, 128  ;;  %p616_p1 = scmp.lt.s32.totalorder %s502_s29, %s502_s29 }
   0xc   :  { %583 = vmatprep.subr.bf16.mxu0 %v636_v8  ;;  %v587_v43 = vpack.c.bf16 %v418_v42, %v417_v41  ;;  %p612_p0 = scmp.ne.s32.totalorder %s502_s29, %s611_s30  ;;  %p617_p2 = scmp.lt.s32.totalorder %s611_s30, %s611_s30 }
   0xd   :  { %543 = vmatpush3.bf16.msra.mxu1 %v606_v27 }
   0xe   :  { %559 = vmatprep.subr.mxu1 %v638_v13  ;;  %p618_p3 = por %p617_p2, %p616_p1 }
   0xf   :  { %585 = vmatpush3.bf16.msra.mxu0 %v584_v12 }
  0x10   :  { %564 = vmatprep.subr.mxu0 %v638_v13  ;;  %545 = vmatmul.mubr.msk.bf16.vlgmr.msra.gmra.mrb[0].mxu1 %vm66_vm0, %v25_v5  ;;  %p619_p4 = pnand %p618_p3, %p612_p0 }
  0x11   :  { %561 = vmatprep.mubr.msk.f32.mxu1 %vm637_vm1, %v638_v13  ;;  %560 = vmatpush3.msk.msra.mxu1 %vm258_vm6, %v254_v31 }
  0x12   :  { %586 = vmatprep.subr.bf16.mxu1 %v636_v8 }
  0xdd   :  { %v104_v14 = vpop.f32.mrb[0].mxu0 }
  0xde   :  { %152 = vrot.lane.b32.xlu0 %v104_v14, %s639_s14  ;;  %v106_v15 = vpop.f32.mrb[1].mxu0 }
  0xdf   :  { %165 = vrot.lane.b32.xlu1 %v106_v15, %s640_s15  ;;  %v108_v16 = vpop.f32.mrb[2].mxu0 }
  0xe0   :  { %v109_v17 = vpop.f32.mrb[3].mxu0 }
  0xe2   :  { %155 = vrot.lane.b32.xlu0 %v104_v14, %s640_s15 }
  0xe3   :  { %v145_v32 = vpop.f32.mrb[0].mxu1 }
  0xe4   :  { %v546_v33 = vpop.f32.mrb[1].mxu1 }
  0xe5   :  { %v148_v34 = vpop.f32.mrb[2].mxu1 }
  0xe6   :  { %412 = vrot.lane.b32.xlu0 %v145_v32, %s640_s15  ;;  %v547_v35 = vpop.f32.mrb[3].mxu1 }
 0x150   :  { %v153_v18 = vpop.permute.xlu0 %152 }
 0x151   :  { %v159_v19 = vsel %vm158_vm2, %v104_v14, %v153_v18  ;;  %v166_v20 = vpop.permute.xlu1 %165 }
 0x152   :  { %v161_v21 = vsel %vm160_vm3, %v159_v19, %v153_v18  ;;  %v168_v23 = vsel %vm160_vm3, %v106_v15, %v166_v20 }
 0x154   :  { %v156_v22 = vpop.permute.xlu0 %155 }
 0x155   :  { %v163_v24 = vsel %vm162_vm4, %v161_v21, %v156_v22 }
 0x156   :  { %v169_v25 = vmul.f32 %v168_v23, %v163_v24 }
 0x158   :  { %557 = vmatmul.mubr.msk.f32.vlgmr.msra.gmra.mrb[4].mxu0 %vm66_vm0, %v169_v25  ;;  %v413_v51 = vpop.permute.xlu0 %412 }
 0x159   :  { %566 = vmatprep.mubr.msk.f32.mxu0 %vm637_vm1, %v638_v13  ;;  %565 = vmatpush3.msk.msra.mxu0 %vm258_vm6, %v334_v40  ;;  %v415_v53 = vsel %vm160_vm3, %v145_v32, %v413_v51 }
 0x22b   :  { %v243_v28 = vpop.f32.mrb[4].mxu0 }
 0x22c   :  { %v558_v29 = vpop.f32.mrb[5].mxu0  ;;  %v248_v30 = vsel %vm247_vm5, %v243_v28, -inf }
 0x22d   :  { %249 = vmax.xlane.f32.xlu1 %v248_v30 }
 0x2ba   :  { %v250_v36 = vpop.xlane.xlu1 %249 }
 0x2bb   :  { %v251_v37 = vsub.f32 %v243_v28, %v250_v36 }
 0x2bd   :  { %v252_v38 = vmul.f32 1.442695, %v251_v37 }
 0x2bf   :  { %607 = vpow2.f32 %v252_v38 }
 0x2c9   :  { %v608_v39 = vpop.eup %607 }
 0x2ca   :  { %562 = vmatmul.mubr.msk.f32.vlgmr.msra.gmra.mrb[4].mxu1 %vm247_vm5, %v608_v39 }
 0x2cb   :  { %577 = vmatprep.mubr.msk.f32.mxu1 %vm637_vm1, %v638_v13  ;;  %588 = vmatpush3.bf16.msra.mxu1 %v587_v43 }
 0x2cc   :  { %589 = vmatprep.subr.bf16.mxu1 %v636_v8 }
 0x2cf   :  { %591 = vmatpush3.bf16.msra.mxu1 %v590_v50 }
 0x39d   :  { %v328_v44 = vpop.f32.mrb[4].mxu1 }
 0x39e   :  { %609 = vrcp.f32 %v328_v44  ;;  %v563_v45 = vpop.f32.mrb[5].mxu1 }
 0x3a8   :  { %v610_v46 = vpop.eup %609 }
 0x3a9   :  { %v333_v47 = vmul.f32 %v610_v46, %v608_v39 }
 0x3ab   :  { %567 = vmatmul.mubr.msk.f32.vlgmr.msra.gmra.mrb[6].mxu0 %vm247_vm5, %v333_v47 }
 0x47e   :  { %v407_v52 = vpop.f32.mrb[6].mxu0 }
 0x47f   :  { %v416_v54 = vmul.f32 %v415_v53, %v407_v52  ;;  %v568_v55 = vpop.f32.mrb[7].mxu0 }
 0x481   :  { %578 = vmatmul.mubr.msk.f32.vlgmr.msra.gmra.mrb[6].mxu1 %vm66_vm0, %v416_v54 }
 0x554   :  { %v490_v56 = vpop.f32.mrb[6].mxu1 }
 0x555   :  { %494 = vst.msk [vmem:[#allocation2] sm:$0xff] %vm160_vm3, %v490_v56  ;;  %v579_v57 = vpop.f32.mrb[7].mxu1 }
 0x556   :  { %622 = shalt.err (!%p619_p4)
}
 0x557   :  { %s623_s8 = scalar_lea.hbm %s771_s6, 128 }
 0x558   :  { %p624_p5 = scmp.ne.s32.totalorder %s771_s6, %s623_s8  ;;  %p627_p6 = scmp.lt.u32.totalorder %s623_s8, %s771_s6 }
 0x55a   :  { %p629_p7 = pnand %p627_p6, %p624_p5 }
 0x55c   :  { %632 = shalt.err (!%p629_p7)
}
 0x55d   :  { %504 = dma.vmem_to_hbm [thread:$0]  %s502_s29, 128, %s771_s6, [#allocation3]  }
 0x55e   :  { %633 = dma.done.wait [#allocation3], 128  }
 0x55f   :  { %634 = vsyncadd [#allocation3], 4294967168 }
 0x560   :  { %508 = vsyncpa [#allocation3], 1 }

// kernel: tpu_custom_call.1
= control target key start
LH: loop header
LB: loop body
LE: loop exit
PB: predicated region body
PF: predicated region fallthrough
CT: control target
= control target key end

     0   :  { %v635_v2 = vmov 0   ;;  %s765_s0 = inlined_call_operand.vmem [shape: bf16[8,32], index: 0, kind: input, shape index: {}]   ;;  %s766_s1 = inlined_call_operand.vmem [shape: bf16[32,384], index: 1, kind: input, shape index: {}]   ;;  %s767_s2 = inlined_call_operand.vmem [shape: f32[32,4], index: 2, kind: input, shape index: {}]   ;;  %s768_s3 = inlined_call_operand.vmem [shape: f32[4,4], index: 3, kind: input, shape index: {}]   ;;  %s769_s4 = inlined_call_operand.vmem [shape: f32[4,32], index: 4, kind: input, shape index: {}]   ;;  %s770_s5 = inlined_call_operand.vmem [shape: f32[32,16], index: 5, kind: input, shape index: {}]   ;;  %s771_s6 = inlined_call_operand.hbm [shape: f32[8,16], index: 6, kind: output, shape index: {}]  }
   0x1   :  { %v599_v0 = vld [vmem:[%s766_s1 + $0x4] ss:$12 sps:$4 sm:$0xff]   ;;  %v601_v1 = vld [vmem:[%s766_s1] ss:$12 sps:$4 sm:$0xff]   ;;  %102 = vmatprep.mubr.bf16.mxu0 %v635_v2  ;;  %v602_v3 = vld [vmem:[%s766_s1 + $0x1c] ss:$12 sps:$4 sm:$0xff]  }
   0x2   :  { %70 = vmatprep.subr.bf16.mxu0 %v599_v0  ;;  %v604_v4 = vld [vmem:[%s766_s1 + $0x18] ss:$12 sps:$4 sm:$0xff]  }
   0x3   :  { %71 = vmatpush1.bf16.msra.mxu0 %v601_v1 }
   0x4   :  { %72 = vmatprep.subr.bf16.mxu0 %v602_v3 }
   0x5   :  { %11 = vsyncpa [#allocation3], 0  ;;  %v25_v5 = vld [vmem:[%s765_s0] sm:$0xf]  ;;  %vm66_vm0 = vcmask 261120   ;;  %v171_v7 = vld [vmem:[%s767_s2 + $0x8] sm:$0xff] }
   0x6   :  { %v170_v6 = vld [vmem:[%s767_s2] sm:$0xff]  ;;  %v636_v8 = vmov 0.0|0.0   ;;  %v172_v10 = vld [vmem:[%s767_s2 + $0x10] sm:$0xff]  ;;  %v173_v11 = vld [vmem:[%s767_s2 + $0x18] sm:$0xff]  ;;  %vm637_vm1 = vmmov 0   ;;  %v638_v13 = vmov 0.0  }
   0x7   :  { %73 = vmatpush1.bf16.msra.mxu0 %v604_v4  ;;  %v581_v9 = vpack.c.bf16 %v171_v7, %v170_v6  ;;  %v584_v12 = vpack.c.bf16 %v173_v11, %v172_v10  ;;  %540 = vmatprep.subr.bf16.mxu1 %v638_v13  ;;  %s639_s14 = smov 8   ;;  %s640_s15 = smov 16   ;;  %vm158_vm2 = vcmask 64512   ;;  %vm160_vm3 = vcmask 130048   ;;  %v605_v26 = vld [vmem:[%s766_s1 + $0x8] ss:$12 sps:$4 sm:$0xff]  }
   0x8   :  { %580 = vmatprep.subr.bf16.mxu0 %v636_v8  ;;  %544 = vmatprep.mubr.msk.bf16.mxu1 %vm637_vm1, %v638_v13  ;;  %vm162_vm4 = vcmask 195584   ;;  %v606_v27 = vld [vmem:[%s766_s1 + $0x20] ss:$12 sps:$4 sm:$0xff]   ;;  %vm247_vm5 = vcmask 31744   ;;  %vm258_vm6 = vcmask 1043456   ;;  %v419_v48 = vld [vmem:[%s770_s5 + $0x10] sm:$0xff] }
   0x9   :  { %541 = vmatpush3.bf16.msra.mxu1 %v605_v26  ;;  %v254_v31 = vld [vmem:[%s768_s3] sm:$0xf]  ;;  %v418_v42 = vld [vmem:[%s770_s5 + $0x8] sm:$0xff]  ;;  %v420_v49 = vld [vmem:[%s770_s5 + $0x18] sm:$0xff]  ;;  %s641_s28 = smov [#allocation2]  }
   0xa   :  { %515 = vmatmul.mubr.msk.bf16.vlgmr.msra.gmra.mrb[0].mxu0 %vm66_vm0, %v25_v5  ;;  %542 = vmatprep.subr.bf16.mxu1 %v638_v13  ;;  %v334_v40 = vld [vmem:[%s769_s4] sm:$0xf]  ;;  %v590_v50 = vpack.c.bf16 %v420_v49, %v419_v48  ;;  %s501_s29 = sshll.u32 %s641_s28, 4  ;;  %s502_s29 = int_to_ptr.vmem [resolvable:$true] %s501_s29 }
   0xb   :  { %582 = vmatpush3.bf16.msra.mxu0 %v581_v9  ;;  %556 = vmatprep.mubr.msk.f32.mxu0 %vm637_vm1, %v638_v13  ;;  %v417_v41 = vld [vmem:[%s770_s5] sm:$0xff]  ;;  %s611_s30 = scalar_lea.vmem %s502_s29, 128  ;;  %p616_p1 = scmp.lt.s32.totalorder %s502_s29, %s502_s29 }
   0xc   :  { %583 = vmatprep.subr.bf16.mxu0 %v636_v8  ;;  %v587_v43 = vpack.c.bf16 %v418_v42, %v417_v41  ;;  %p612_p0 = scmp.ne.s32.totalorder %s502_s29, %s611_s30  ;;  %p617_p2 = scmp.lt.s32.totalorder %s611_s30, %s611_s30 }
   0xd   :  { %543 = vmatpush3.bf16.msra.mxu1 %v606_v27 }
   0xe   :  { %559 = vmatprep.subr.mxu1 %v638_v13  ;;  %p618_p3 = por %p617_p2, %p616_p1 }
   0xf   :  { %585 = vmatpush3.bf16.msra.mxu0 %v584_v12 }
  0x10   :  { %564 = vmatprep.subr.mxu0 %v638_v13  ;;  %545 = vmatmul.mubr.msk.bf16.vlgmr.msra.gmra.mrb[0].mxu1 %vm66_vm0, %v25_v5  ;;  %p619_p4 = pnand %p618_p3, %p612_p0 }
  0x11   :  { %561 = vmatprep.mubr.msk.f32.mxu1 %vm637_vm1, %v638_v13  ;;  %560 = vmatpush3.msk.msra.mxu1 %vm258_vm6, %v254_v31 }
  0x12   :  { %586 = vmatprep.subr.bf16.mxu1 %v636_v8 }
  0xdd   :  { %v104_v14 = vpop.f32.mrb[0].mxu0 }
  0xde   :  { %152 = vrot.lane.b32.xlu0 %v104_v14, %s639_s14  ;;  %v106_v15 = vpop.f32.mrb[1].mxu0 }
  0xdf   :  { %165 = vrot.lane.b32.xlu1 %v106_v15, %s640_s15  ;;  %v108_v16 = vpop.f32.mrb[2].mxu0 }
  0xe0   :  { %v109_v17 = vpop.f32.mrb[3].mxu0 }
  0xe2   :  { %155 = vrot.lane.b32.xlu0 %v104_v14, %s640_s15 }
  0xe3   :  { %v145_v32 = vpop.f32.mrb[0].mxu1 }
  0xe4   :  { %v546_v33 = vpop.f32.mrb[1].mxu1 }
  0xe5   :  { %v148_v34 = vpop.f32.mrb[2].mxu1 }
  0xe6   :  { %412 = vrot.lane.b32.xlu0 %v145_v32, %s640_s15  ;;  %v547_v35 = vpop.f32.mrb[3].mxu1 }
 0x150   :  { %v153_v18 = vpop.permute.xlu0 %152 }
 0x151   :  { %v159_v19 = vsel %vm158_vm2, %v104_v14, %v153_v18  ;;  %v166_v20 = vpop.permute.xlu1 %165 }
 0x152   :  { %v161_v21 = vsel %vm160_vm3, %v159_v19, %v153_v18  ;;  %v168_v23 = vsel %vm160_vm3, %v106_v15, %v166_v20 }
 0x154   :  { %v156_v22 = vpop.permute.xlu0 %155 }
 0x155   :  { %v163_v24 = vsel %vm162_vm4, %v161_v21, %v156_v22 }
 0x156   :  { %v169_v25 = vmul.f32 %v168_v23, %v163_v24 }
 0x158   :  { %557 = vmatmul.mubr.msk.f32.vlgmr.msra.gmra.mrb[4].mxu0 %vm66_vm0, %v169_v25  ;;  %v413_v51 = vpop.permute.xlu0 %412 }
 0x159   :  { %566 = vmatprep.mubr.msk.f32.mxu0 %vm637_vm1, %v638_v13  ;;  %565 = vmatpush3.msk.msra.mxu0 %vm258_vm6, %v334_v40  ;;  %v415_v53 = vsel %vm160_vm3, %v145_v32, %v413_v51 }
 0x22b   :  { %v243_v28 = vpop.f32.mrb[4].mxu0 }
 0x22c   :  { %v558_v29 = vpop.f32.mrb[5].mxu0  ;;  %v248_v30 = vsel %vm247_vm5, %v243_v28, -inf }
 0x22d   :  { %249 = vmax.xlane.f32.xlu1 %v248_v30 }
 0x2ba   :  { %v250_v36 = vpop.xlane.xlu1 %249 }
 0x2bb   :  { %v251_v37 = vsub.f32 %v243_v28, %v250_v36 }
 0x2bd   :  { %v252_v38 = vmul.f32 1.442695, %v251_v37 }
 0x2bf   :  { %607 = vpow2.f32 %v252_v38 }
 0x2c9   :  { %v608_v39 = vpop.eup %607 }
 0x2ca   :  { %562 = vmatmul.mubr.msk.f32.vlgmr.msra.gmra.mrb[4].mxu1 %vm247_vm5, %v608_v39 }
 0x2cb   :  { %577 = vmatprep.mubr.msk.f32.mxu1 %vm637_vm1, %v638_v13  ;;  %588 = vmatpush3.bf16.msra.mxu1 %v587_v43 }
 0x2cc   :  { %589 = vmatprep.subr.bf16.mxu1 %v636_v8 }
 0x2cf   :  { %591 = vmatpush3.bf16.msra.mxu1 %v590_v50 }
 0x39d   :  { %v328_v44 = vpop.f32.mrb[4].mxu1 }
 0x39e   :  { %609 = vrcp.f32 %v328_v44  ;;  %v563_v45 = vpop.f32.mrb[5].mxu1 }
 0x3a8   :  { %v610_v46 = vpop.eup %609 }
 0x3a9   :  { %v333_v47 = vmul.f32 %v610_v46, %v608_v39 }
 0x3ab   :  { %567 = vmatmul.mubr.msk.f32.vlgmr.msra.gmra.mrb[6].mxu0 %vm247_vm5, %v333_v47 }
 0x47e   :  { %v407_v52 = vpop.f32.mrb[6].mxu0 }
 0x47f   :  { %v416_v54 = vmul.f32 %v415_v53, %v407_v52  ;;  %v568_v55 = vpop.f32.mrb[7].mxu0 }
 0x481   :  { %578 = vmatmul.mubr.msk.f32.vlgmr.msra.gmra.mrb[6].mxu1 %vm66_vm0, %v416_v54 }
 0x554   :  { %v490_v56 = vpop.f32.mrb[6].mxu1 }
 0x555   :  { %494 = vst.msk [vmem:[#allocation2] sm:$0xff] %vm160_vm3, %v490_v56  ;;  %v579_v57 = vpop.f32.mrb[7].mxu1 }
 0x556   :  { %622 = shalt.err (!%p619_p4)
}
 0x557   :  { %s623_s8 = scalar_lea.hbm %s771_s6, 128 }
 0x558   :  { %p624_p5 = scmp.ne.s32.totalorder %s771_s6, %s623_s8  ;;  %p627_p6 = scmp.lt.u32.totalorder %s623_s8, %s771_s6 }
 0x55a   :  { %p629_p7 = pnand %p627_p6, %p624_p5 }
 0x55c   :  { %632 = shalt.err (!%p629_p7)
}
 0x55d   :  { %504 = dma.vmem_to_hbm [thread:$0]  %s502_s29, 128, %s771_s6, [#allocation3]  }
 0x55e   :  { %633 = dma.done.wait [#allocation3], 128  }
 0x55f   :  { %634 = vsyncadd [#allocation3], 4294967168 }
 0x560   :  { %508 = vsyncpa [#allocation3], 1 }

</bundles_post_ra>
